<compile_context>
chip_gen: v7x
topology: tpu7x:2x2x1
jax: 0.10.0
libtpu: 0.0.40
codegen_flags: <defaults>
</compile_context>

<pallas_src>
import math

import jax
import jax.numpy as jnp
from jax.experimental import pallas as pl
from jax.experimental.pallas import tpu as pltpu


def sage_conv_kernel(adj_ref, h_nbr_ref, h_self_ref, inv_deg_ref,
                     w_self_ref, w_neigh_ref, b_ref, o_ref, acc_ref):
    k = pl.program_id(1)

    @pl.when(k == 0)
    def _init():
        acc_ref[...] = jnp.zeros_like(acc_ref)

    # Neighbor-feature sum for this (row-tile, col-tile): A_tile @ h_tile.
    # Adjacency is stored int8 in HBM and upcast to bf16 right before the MXU;
    # f32 accumulation on the MXU.
    adj = adj_ref[...].astype(h_nbr_ref.dtype)
    acc_ref[...] += jnp.dot(adj, h_nbr_ref[...],
                            preferred_element_type=jnp.float32)

    @pl.when(k == pl.num_programs(1) - 1)
    def _finalize():
        # Mean aggregation: multiply by precomputed 1/deg (exact f32, broadcast
        # over lanes) -- no per-element divide / select in the hot path.
        h_n = (acc_ref[...] * inv_deg_ref[...]).astype(h_nbr_ref.dtype)
        # Fused linear on [h, h_N] as two dots (no concat copy in VMEM).
        out = jnp.dot(h_self_ref[...], w_self_ref[...],
                      preferred_element_type=jnp.float32)
        out = out + jnp.dot(h_n, w_neigh_ref[...],
                            preferred_element_type=jnp.float32)
        out = out + b_ref[...]
        o_ref[...] = out.astype(o_ref.dtype)


def _round_up(x, m):
    return ((x + m - 1) // m) * m


def _vmem_bytes(tm, tk, f_in_pad, f_out_pad, out_itemsize):
    """Live VMEM bytes for one pipelined grid step (double-buffered inputs)."""
    adj_b = 2 * tm * tk * 1                      # int8 adjacency tile
    h_nbr_b = 2 * tk * f_in_pad * 2              # bf16 neighbor features
    h_self_b = 2 * tm * f_in_pad * 2             # bf16 self features
    w_b = 2 * 2 * f_in_pad * f_out_pad * 2       # bf16 W_self + W_neigh
    bias_b = 2 * 8 * f_out_pad * 4               # (1, F_out) padded to 8 sublanes
    inv_deg_b = 2 * tm * 128 * 4                 # (tm, 1) padded to 128 lanes
    out_b = 2 * tm * f_out_pad * out_itemsize
    acc_b = tm * f_in_pad * 4                    # f32 accumulator scratch
    return adj_b + h_nbr_b + h_self_b + w_b + bias_b + inv_deg_b + out_b + acc_b


def sage_conv(adj, h, w_full, bias, *, tm=256, tk=256,
              compute_dtype=jnp.bfloat16, out_dtype=None):
    """SAGEConv forward.

    adj:    (N, N) float, adj[i, j] = 1 iff edge j -> i.
    h:      (N, F_in) node features.
    w_full: (F_out, 2*F_in) nn.Linear weight (acts on concat([h, h_N])).
    bias:   (F_out,) nn.Linear bias.
    """
    n, f_in = h.shape
    f_out, two_f_in = w_full.shape
    assert two_f_in == 2 * f_in and adj.shape == (n, n)
    out_dtype = out_dtype or h.dtype
    out_itemsize = jnp.dtype(out_dtype).itemsize

    lane = 128
    # Clamp tiles for small graphs so padding stays minimal (tiles stay >= 128,
    # which also satisfies the int8 (32,128) min-tile).
    tm = min(tm, _round_up(n, lane))
    tk = min(tk, _round_up(n, lane))

    # Per-axis padding of the O(N^2) adjacency (rows to tm, cols to tk).
    n_rows_pad = _round_up(n, tm)
    n_cols_pad = _round_up(n, tk)
    # Feature matrix is O(N*F): pad its rows to a common multiple so the same
    # array serves both the (i)-indexed self blocks and (k)-indexed nbr blocks.
    n_h_pad = _round_up(n, math.lcm(tm, tk))
    f_in_pad = _round_up(f_in, lane)
    f_out_pad = _round_up(f_out, lane)

    # Exact-f32 mean normalization precomputed in the wrapper.
    deg = jnp.sum(adj, axis=1, keepdims=True)
    inv_deg = jnp.where(deg > 0.0, 1.0 / jnp.maximum(deg, 1.0), 0.0)
    inv_deg = jnp.pad(inv_deg.astype(jnp.float32), ((0, n_rows_pad - n), (0, 0)))

    # Adjacency stays int8 in HBM (0/1 exact); features in bf16.
    adj_p = jnp.pad(adj, ((0, n_rows_pad - n), (0, n_cols_pad - n)))
    adj_p = adj_p.astype(jnp.int8)
    h_p = jnp.pad(h, ((0, n_h_pad - n), (0, f_in_pad - f_in))).astype(compute_dtype)

    # Split Linear weight into self / neighbor halves, transpose to
    # (F_in, F_out), pad each to lane multiples. Applied as two dots in-kernel.
    pad_w = ((0, f_in_pad - f_in), (0, f_out_pad - f_out))
    w_self = jnp.pad(jnp.transpose(w_full[:, :f_in]), pad_w).astype(compute_dtype)
    w_neigh = jnp.pad(jnp.transpose(w_full[:, f_in:]), pad_w).astype(compute_dtype)
    bias_p = jnp.pad(bias.reshape(1, f_out),
                     ((0, 0), (0, f_out_pad - f_out))).astype(jnp.float32)

    grid = (n_rows_pad // tm, n_cols_pad // tk)
    n_row_tiles = grid[0]

    cost = pl.CostEstimate(
        flops=(2 * n_rows_pad * n_cols_pad * f_in_pad
               + 2 * n_rows_pad * (2 * f_in_pad) * f_out_pad),
        transcendentals=0,
        bytes_accessed=int(
            n_rows_pad * n_cols_pad * 1                       # int8 adjacency
            + n_row_tiles * n_cols_pad * f_in_pad * 2         # h_nbr per row tile
            + n_rows_pad * f_in_pad * 2                       # h_self
            + 2 * f_in_pad * f_out_pad * 2                    # weight halves
            + n_rows_pad * 4 + f_out_pad * 4                  # inv_deg + bias
            + n_rows_pad * f_out_pad * out_itemsize),         # output
    )

    needed = _vmem_bytes(tm, tk, f_in_pad, f_out_pad, out_itemsize)
    vmem_limit = int(min(max(2 * needed, 32 * 1024 * 1024), 64 * 1024 * 1024))

    out_p = pl.pallas_call(
        sage_conv_kernel,
        out_shape=jax.ShapeDtypeStruct((n_rows_pad, f_out_pad), out_dtype),
        grid_spec=pltpu.PrefetchScalarGridSpec(
            num_scalar_prefetch=0,
            grid=grid,
            in_specs=[
                pl.BlockSpec((tm, tk), lambda i, k: (i, k)),           # adjacency (int8)
                pl.BlockSpec((tk, f_in_pad), lambda i, k: (k, 0)),     # neighbor feats
                pl.BlockSpec((tm, f_in_pad), lambda i, k: (i, 0)),     # self feats
                pl.BlockSpec((tm, 1), lambda i, k: (i, 0)),            # 1 / deg
                pl.BlockSpec((f_in_pad, f_out_pad), lambda i, k: (0, 0)),  # W_self
                pl.BlockSpec((f_in_pad, f_out_pad), lambda i, k: (0, 0)),  # W_neigh
                pl.BlockSpec((1, f_out_pad), lambda i, k: (0, 0)),     # bias
            ],
            out_specs=pl.BlockSpec((tm, f_out_pad), lambda i, k: (i, 0)),
            scratch_shapes=[pltpu.VMEM((tm, f_in_pad), jnp.float32)],
        ),
        compiler_params=pltpu.CompilerParams(
            # Row tiles are independent (megacore-shardable); the neighbor-tile
            # axis is a reduction into the VMEM accumulator.
            dimension_semantics=("parallel", "arbitrary"),
            vmem_limit_bytes=vmem_limit,
        ),
        cost_estimate=cost,
    )(adj_p, h_p, h_p, inv_deg, w_self, w_neigh, bias_p)

    return out_p[:n, :f_out]


if __name__ == "__main__":
    key = jax.random.PRNGKey(0)
    k_adj, k_h, k_w, k_b = jax.random.split(key, 4)

    N = 16         # number of nodes
    IN_FEAT = 32   # input feature size
    OUT_FEAT = 32  # output feature size

    # Deterministic random graph (dense adjacency, A[i, j] = 1 iff edge j -> i).
    adj = (jax.random.uniform(k_adj, (N, N)) < 0.3).astype(jnp.float32)
    h = jax.random.normal(k_h, (N, IN_FEAT), dtype=jnp.float32)

    # nn.Linear(in_feat * 2, out_feat): weight (OUT, 2*IN), bias (OUT,).
    bound = 1.0 / jnp.sqrt(2.0 * IN_FEAT)
    w_full = jax.random.uniform(k_w, (OUT_FEAT, 2 * IN_FEAT),
                                minval=-bound, maxval=bound, dtype=jnp.float32)
    b_full = jax.random.uniform(k_b, (OUT_FEAT,),
                                minval=-bound, maxval=bound, dtype=jnp.float32)

    out = sage_conv(adj, h, w_full, b_full)
    out = jax.block_until_ready(out)

    # --- References ---
    deg = jnp.sum(adj, axis=1, keepdims=True)
    inv_deg = jnp.where(deg > 0.0, 1.0 / jnp.maximum(deg, 1.0), 0.0)

    # (1) Mixed-precision reference matching the kernel's bf16-operand /
    #     f32-accumulate MXU math -> tight check of tiling/padding/fusion.
    adj_b = adj.astype(jnp.bfloat16)
    h_b = h.astype(jnp.bfloat16)
    agg = jnp.dot(adj_b, h_b, preferred_element_type=jnp.float32)
    h_n_b = (agg * inv_deg).astype(jnp.bfloat16)
    w_t_b = jnp.transpose(w_full).astype(jnp.bfloat16)
    ref_mix = (jnp.dot(h_b, w_t_b[:IN_FEAT], preferred_element_type=jnp.float32)
               + jnp.dot(h_n_b, w_t_b[IN_FEAT:], preferred_element_type=jnp.float32)
               + b_full)

    # (2) Exact f32 reference of the original module semantics (loose tol,
    #     bounds the bf16 compute error).
    h_n_ref = jnp.where(deg > 0.0, (adj @ h) / jnp.maximum(deg, 1.0), 0.0)
    ref_f32 = jnp.concatenate([h, h_n_ref], axis=1) @ jnp.transpose(w_full) + b_full

    assert jnp.allclose(out, ref_mix, atol=1e-2, rtol=1e-2), \
        float(jnp.max(jnp.abs(out - ref_mix)))
    assert jnp.allclose(out, ref_f32, atol=1e-1, rtol=1e-1), \
        float(jnp.max(jnp.abs(out - ref_f32)))

    print("KERNEL_OK")
</pallas_src>

<mosaic_0001>
module attributes {stable_mosaic.version = 11 : i64} {
  func.func @sage_conv_kernel(%arg0: i32, %arg1: i32, %arg2: memref<128x128xi8, #tpu.memory_space<vmem>>, %arg3: memref<128x128xbf16, #tpu.memory_space<vmem>>, %arg4: memref<128x128xbf16, #tpu.memory_space<vmem>>, %arg5: memref<128x1xf32, #tpu.memory_space<vmem>>, %arg6: memref<128x128xbf16, #tpu.memory_space<vmem>>, %arg7: memref<128x128xbf16, #tpu.memory_space<vmem>>, %arg8: memref<1x128xf32, #tpu.memory_space<vmem>>, %arg9: memref<128x128xf32, #tpu.memory_space<vmem>>, %arg10: memref<128x128xf32, #tpu.memory_space<vmem>>) attributes {dimension_semantics = [#tpu.dimension_semantics<parallel>, #tpu.dimension_semantics<arbitrary>], iteration_bounds = array<i64: 1, 1>, scalar_prefetch = 0 : i64, scratch_operands = 1 : i64, tpu.core_type = #tpu.core_type<tc>, window_params = [{transform_indices = @transform_0, window_bounds = array<i64: 128, 128>}, {transform_indices = @transform_1, window_bounds = array<i64: 128, 128>}, {transform_indices = @transform_2, window_bounds = array<i64: 128, 128>}, {transform_indices = @transform_3, window_bounds = array<i64: 128, 1>}, {pipeline_mode = #tpu.pipeline_mode<synchronous>, transform_indices = @transform_4, window_bounds = array<i64: 128, 128>}, {pipeline_mode = #tpu.pipeline_mode<synchronous>, transform_indices = @transform_5, window_bounds = array<i64: 128, 128>}, {pipeline_mode = #tpu.pipeline_mode<synchronous>, transform_indices = @transform_6, window_bounds = array<i64: 1, 128>}, {transform_indices = @transform_7, window_bounds = array<i64: 128, 128>}]} {
    %c0_i32 = arith.constant 0 : i32
    %0 = arith.cmpi eq, %arg1, %c0_i32 : i32
    %1 = arith.extui %0 : i1 to i32
    %c0_i32_0 = arith.constant 0 : i32
    %2 = arith.cmpi ne, %1, %c0_i32_0 : i32
    scf.if %2 {
      %cst_10 = arith.constant 0.000000e+00 : f32
      %13 = vector.broadcast %cst_10 : f32 to vector<128x128xf32>
      %c0_11 = arith.constant 0 : index
      %c0_12 = arith.constant 0 : index
      %14 = vector.load %arg10[%c0_11, %c0_12] : memref<128x128xf32, #tpu.memory_space<vmem>>, vector<128x128xf32>
      tpu.vector_store %arg10[%c0_11, %c0_12], %13 {strides = array<i32>} : memref<128x128xf32, #tpu.memory_space<vmem>>, vector<128x128xf32>,
    } else {
    }
    %c0 = arith.constant 0 : index
    %c0_1 = arith.constant 0 : index
    %3 = vector.load %arg2[%c0, %c0_1] : memref<128x128xi8, #tpu.memory_space<vmem>>, vector<128x128xi8>
    %4 = arith.sitofp %3 : vector<128x128xi8> to vector<128x128xbf16>
    %c0_2 = arith.constant 0 : index
    %c0_3 = arith.constant 0 : index
    %5 = vector.load %arg10[%c0_2, %c0_3] : memref<128x128xf32, #tpu.memory_space<vmem>>, vector<128x128xf32>
    %c0_4 = arith.constant 0 : index
    %c0_5 = arith.constant 0 : index
    %6 = vector.load %arg3[%c0_4, %c0_5] : memref<128x128xbf16, #tpu.memory_space<vmem>>, vector<128x128xbf16>
    %cst = arith.constant dense<0.000000e+00> : vector<128x128xf32>
    %7 = tpu.matmul %4, %6, %cst {dimension_numbers = #tpu.dot_dimension_numbers<[1], [0], [0], [1], [0, 0, 1, 1], [], []>} : vector<128x128xbf16>, vector<128x128xbf16>, vector<128x128xf32> -> vector<128x128xf32>
    %8 = arith.addf %5, %7 : vector<128x128xf32>
    %c0_6 = arith.constant 0 : index
    %c0_7 = arith.constant 0 : index
    %9 = vector.load %arg10[%c0_6, %c0_7] : memref<128x128xf32, #tpu.memory_space<vmem>>, vector<128x128xf32>
    tpu.vector_store %arg10[%c0_6, %c0_7], %8 {strides = array<i32>} : memref<128x128xf32, #tpu.memory_space<vmem>>, vector<128x128xf32>,
    %c0_i32_8 = arith.constant 0 : i32
    %10 = arith.cmpi eq, %arg1, %c0_i32_8 : i32
    %11 = arith.extui %10 : i1 to i32
    %c0_i32_9 = arith.constant 0 : i32
    %12 = arith.cmpi ne, %11, %c0_i32_9 : i32
    scf.if %12 {
      %c0_10 = arith.constant 0 : index
      %c0_11 = arith.constant 0 : index
      %13 = vector.load %arg10[%c0_10, %c0_11] : memref<128x128xf32, #tpu.memory_space<vmem>>, vector<128x128xf32>
      %c0_12 = arith.constant 0 : index
      %c0_13 = arith.constant 0 : index
      %14 = vector.load %arg5[%c0_12, %c0_13] : memref<128x1xf32, #tpu.memory_space<vmem>>, vector<128x1xf32>
      %15 = vector.broadcast %14 : vector<128x1xf32> to vector<128x128xf32>
      %16 = arith.mulf %13, %15 : vector<128x128xf32>
      %17 = arith.truncf %16 : vector<128x128xf32> to vector<128x128xbf16>
      %c0_14 = arith.constant 0 : index
      %c0_15 = arith.constant 0 : index
      %18 = vector.load %arg4[%c0_14, %c0_15] : memref<128x128xbf16, #tpu.memory_space<vmem>>, vector<128x128xbf16>
      %c0_16 = arith.constant 0 : index
      %c0_17 = arith.constant 0 : index
      %19 = vector.load %arg6[%c0_16, %c0_17] : memref<128x128xbf16, #tpu.memory_space<vmem>>, vector<128x128xbf16>
      %cst_18 = arith.constant dense<0.000000e+00> : vector<128x128xf32>
      %20 = tpu.matmul %18, %19, %cst_18 {dimension_numbers = #tpu.dot_dimension_numbers<[1], [0], [0], [1], [0, 0, 1, 1], [], []>} : vector<128x128xbf16>, vector<128x128xbf16>, vector<128x128xf32> -> vector<128x128xf32>
      %c0_19 = arith.constant 0 : index
      %c0_20 = arith.constant 0 : index
      %21 = vector.load %arg7[%c0_19, %c0_20] : memref<128x128xbf16, #tpu.memory_space<vmem>>, vector<128x128xbf16>
      %cst_21 = arith.constant dense<0.000000e+00> : vector<128x128xf32>
      %22 = tpu.matmul %17, %21, %cst_21 {dimension_numbers = #tpu.dot_dimension_numbers<[1], [0], [0], [1], [0, 0, 1, 1], [], []>} : vector<128x128xbf16>, vector<128x128xbf16>, vector<128x128xf32> -> vector<128x128xf32>
      %23 = arith.addf %20, %22 : vector<128x128xf32>
      %c0_22 = arith.constant 0 : index
      %c0_23 = arith.constant 0 : index
      %24 = vector.load %arg8[%c0_22, %c0_23] : memref<1x128xf32, #tpu.memory_space<vmem>>, vector<1x128xf32>
      %25 = vector.broadcast %24 : vector<1x128xf32> to vector<128x128xf32>
      %26 = arith.addf %23, %25 : vector<128x128xf32>
      %c0_24 = arith.constant 0 : index
      %c0_25 = arith.constant 0 : index
      %27 = vector.load %arg9[%c0_24, %c0_25] : memref<128x128xf32, #tpu.memory_space<vmem>>, vector<128x128xf32>
      tpu.vector_store %arg9[%c0_24, %c0_25], %26 {strides = array<i32>} : memref<128x128xf32, #tpu.memory_space<vmem>>, vector<128x128xf32>,
    } else {
    }
    return
  }
  func.func @transform_0(%arg0: i32, %arg1: i32) -> (i32, i32) {
    %c0_i32 = arith.constant 0 : i32
    return %arg0, %arg1 : i32, i32
  }
  func.func @transform_1(%arg0: i32, %arg1: i32) -> (i32, i32) {
    %c0_i32 = arith.constant 0 : i32
    %c0_i32_0 = arith.constant 0 : i32
    return %arg1, %c0_i32 : i32, i32
  }
  func.func @transform_2(%arg0: i32, %arg1: i32) -> (i32, i32) {
    %c0_i32 = arith.constant 0 : i32
    %c0_i32_0 = arith.constant 0 : i32
    return %arg0, %c0_i32 : i32, i32
  }
  func.func @transform_3(%arg0: i32, %arg1: i32) -> (i32, i32) {
    %c0_i32 = arith.constant 0 : i32
    %c0_i32_0 = arith.constant 0 : i32
    return %arg0, %c0_i32 : i32, i32
  }
  func.func @transform_4(%arg0: i32, %arg1: i32) -> (i32, i32) {
    %c0_i32 = arith.constant 0 : i32
    %c0_i32_0 = arith.constant 0 : i32
    %c0_i32_1 = arith.constant 0 : i32
    return %c0_i32, %c0_i32_0 : i32, i32
  }
  func.func @transform_5(%arg0: i32, %arg1: i32) -> (i32, i32) {
    %c0_i32 = arith.constant 0 : i32
    %c0_i32_0 = arith.constant 0 : i32
    %c0_i32_1 = arith.constant 0 : i32
    return %c0_i32, %c0_i32_0 : i32, i32
  }
  func.func @transform_6(%arg0: i32, %arg1: i32) -> (i32, i32) {
    %c0_i32 = arith.constant 0 : i32
    %c0_i32_0 = arith.constant 0 : i32
    %c0_i32_1 = arith.constant 0 : i32
    return %c0_i32, %c0_i32_0 : i32, i32
  }
  func.func @transform_7(%arg0: i32, %arg1: i32) -> (i32, i32) {
    %c0_i32 = arith.constant 0 : i32
    %c0_i32_0 = arith.constant 0 : i32
    return %arg0, %c0_i32 : i32, i32
  }
}

</mosaic_0001>

<bundles_post_ra>
// kernel: tpu_custom_call.1
= control target key start
LH: loop header
LB: loop body
LE: loop exit
PB: predicated region body
PF: predicated region fallthrough
CT: control target
= control target key end

     0   :  { %12 = vsyncpa [#allocation4], 0  ;;  %s1498_s0 = inlined_call_operand.hbm [shape: s8[128,128], index: 0, kind: input, shape index: {}]   ;;  %s1499_s1 = inlined_call_operand.vmem [shape: bf16[128,128], index: 1, kind: input, shape index: {}]   ;;  %s1500_s2 = inlined_call_operand.vmem [shape: bf16[128,128], index: 2, kind: input, shape index: {}]   ;;  %s1501_s3 = inlined_call_operand.vmem [shape: f32[128,1], index: 3, kind: input, shape index: {}]   ;;  %s1502_s4 = inlined_call_operand.hbm [shape: bf16[128,128], index: 4, kind: input, shape index: {}]   ;;  %s1503_s5 = inlined_call_operand.hbm [shape: bf16[128,128], index: 5, kind: input, shape index: {}]   ;;  %s1504_s6 = inlined_call_operand.vmem [shape: f32[1,128], index: 6, kind: input, shape index: {}]   ;;  %s1505_s7 = inlined_call_operand.hbm [shape: f32[128,128], index: 7, kind: output, shape index: {}]  }
   0x1   :  { %13 = vsyncpa [#allocation7], 0 }
   0x2   :  { %14 = vsyncpa [#allocation5], 0  ;;  %s1238_s24 = smov [#allocation6]   ;;  %s1144_s28 = scalar_lea.hbm %s1502_s4, 1024 }
   0x3   :  { %s38_s25 = sshll.u32 %s1238_s24, 4  ;;  %p1145_p0 = scmp.ne.s32.totalorder %s1502_s4, %s1144_s28  ;;  %s39_s25 = int_to_ptr.vmem [resolvable:$true] %s38_s25 }
   0x4   :  { %p1148_p1 = scmp.lt.u32.totalorder %s1144_s28, %s1502_s4 }
   0x6   :  { %p1150_p2 = pnand %p1148_p1, %p1145_p0 }
   0x8   :  { %1153 = shalt.err (!%p1150_p2)
}
   0x9   :  { %s1154_s10 = scalar_lea.vmem %s39_s25, 1024  ;;  %p1159_p4 = scmp.lt.s32.totalorder %s39_s25, %s39_s25 }
   0xa   :  { %p1155_p3 = scmp.ne.s32.totalorder %s39_s25, %s1154_s10  ;;  %p1160_p5 = scmp.lt.s32.totalorder %s1154_s10, %s1154_s10 }
   0xc   :  { %p1161_p6 = por %p1160_p5, %p1159_p4 }
   0xe   :  { %p1162_p7 = pnand %p1161_p6, %p1155_p3 }
  0x10   :  { %1165 = shalt.err (!%p1162_p7)
}
  0x11   :  { %s1239_s11 = smov 64   ;;  %s1240_s12 = smov 4  }
  0x12   :  { %44 = dma.hbm_to_vmem [thread:$0]  %s1502_s4, 1024, %s39_s25, [#allocation7], %s1239_s11, %s1239_s11, %s1240_s12  }
  0x13   :  { %s1241_s15 = smov [#allocation3]   ;;  %s1166_s19 = scalar_lea.hbm %s1498_s0, 512 }
  0x14   :  { %s20_s16 = sshll.u32 %s1241_s15, 4  ;;  %p1167_p8 = scmp.ne.s32.totalorder %s1498_s0, %s1166_s19  ;;  %s21_s16 = int_to_ptr.vmem [resolvable:$true] %s20_s16 }
  0x15   :  { %p1170_p9 = scmp.lt.u32.totalorder %s1166_s19, %s1498_s0 }
  0x17   :  { %p1172_p10 = pnand %p1170_p9, %p1167_p8 }
  0x19   :  { %1175 = shalt.err (!%p1172_p10)
}
  0x1a   :  { %s1176_s24 = scalar_lea.vmem %s21_s16, 512  ;;  %p1181_p12 = scmp.lt.s32.totalorder %s21_s16, %s21_s16 }
  0x1b   :  { %p1177_p11 = scmp.ne.s32.totalorder %s21_s16, %s1176_s24  ;;  %p1182_p13 = scmp.lt.s32.totalorder %s1176_s24, %s1176_s24 }
  0x1d   :  { %p1183_p0 = por %p1182_p13, %p1181_p12 }
  0x1f   :  { %p1184_p1 = pnand %p1183_p0, %p1177_p11 }
  0x21   :  { %1187 = shalt.err (!%p1184_p1)
}
  0x22   :  { %s1242_s4 = smov 128   ;;  %s1243_s25 = smov 8  }
  0x23   :  { %26 = dma.hbm_to_vmem [thread:$0]  %s1498_s0, 512, %s21_s16, [#allocation4], %s1242_s4, %s1242_s4, %s1243_s25  }
  0x24   :  { %s1244_s28 = smov [#allocation8]   ;;  %s1188_s9 = scalar_lea.hbm %s1503_s5, 1024 }
  0x25   :  { %s50_s29 = sshll.u32 %s1244_s28, 4  ;;  %p1189_p2 = scmp.ne.s32.totalorder %s1503_s5, %s1188_s9  ;;  %s51_s29 = int_to_ptr.vmem [resolvable:$true] %s50_s29 }
  0x26   :  { %p1192_p3 = scmp.lt.u32.totalorder %s1188_s9, %s1503_s5 }
  0x28   :  { %p1194_p4 = pnand %p1192_p3, %p1189_p2 }
  0x2a   :  { %1197 = shalt.err (!%p1194_p4)
}
  0x2b   :  { %s1198_s17 = scalar_lea.vmem %s51_s29, 1024  ;;  %p1203_p6 = scmp.lt.s32.totalorder %s51_s29, %s51_s29 }
  0x2c   :  { %p1199_p5 = scmp.ne.s32.totalorder %s51_s29, %s1198_s17  ;;  %p1204_p7 = scmp.lt.s32.totalorder %s1198_s17, %s1198_s17 }
  0x2e   :  { %p1205_p8 = por %p1204_p7, %p1203_p6 }
  0x30   :  { %p1206_p9 = pnand %p1205_p8, %p1199_p5 }
  0x32   :  { %1209 = shalt.err (!%p1206_p9)
}
  0x33   :  { %56 = dma.hbm_to_vmem [thread:$0]  %s1503_s5, 1024, %s51_s29, [#allocation7], %s1239_s11, %s1239_s11, %s1240_s12  }
  0x34   :  { %1232 = dma.done.wait [#allocation4], 512  }
  0x35   :  { %1233 = vsyncadd [#allocation4], 4294966784 }
  0x36   :  { %1234 = dma.done.wait [#allocation7], 2048  }
  0x37   :  { %1235 = vsyncadd [#allocation7], 4294965248  ;;  %v1245_v0 = vmov 0   ;;  %v1112_v1 = vld [vmem:[%s1499_s1] sm:$0xff]   ;;  %v1113_v2 = vld [vmem:[%s1499_s1 + $0x8] sm:$0xff]  }
  0x38   :  { %1110 = vset.pattern.permute.xlu0 %v1245_v0  ;;  %1111 = vset.pattern.permute.xlu1 %v1245_v0  ;;  %v1114_v3 = vld [vmem:[%s1499_s1 + $0x10] sm:$0xff]   ;;  %v1115_v4 = vld [vmem:[%s1499_s1 + $0x18] sm:$0xff]   ;;  %v1344_v5 = vld [vmem:[#allocation3] sm:$0xff] }
  0x39   :  { %973 = vmatprep.subr.bf16.mxu0 %v1112_v1  ;;  %v93_v6 = vunpack.c.l.s8.bf16 %v1344_v5  ;;  %v329_v7 = vld [vmem:[%s1501_s3] sm:$0xff]  ;;  %v331_v8 = vld [vmem:[%s1501_s3 + $0x10] sm:$0xff]  ;;  %v330_v9 = vld [vmem:[%s1501_s3 + $0x8] sm:$0xff]  ;;  %v94_v31 = vunpack.c.h.s8.bf16 %v1344_v5 }
  0x3a   :  { %974 = vmatpush3.bf16.msra.mxu0 %v1112_v1  ;;  %347 = vperm.xlu0 %1110, %v329_v7   ;;  %v332_v10 = vld [vmem:[%s1501_s3 + $0x18] sm:$0xff]  ;;  %v1116_v11 = vld [vmem:[%s1499_s1 + $0x20] sm:$0xff]   ;;  %v334_v13 = vld [vmem:[%s1501_s3 + $0x28] sm:$0xff] }
  0x3b   :  { %975 = vmatprep.subr.bf16.mxu0 %v1113_v2  ;;  %357 = vperm.xlu1 %1111, %v331_v8   ;;  %v333_v12 = vld [vmem:[%s1501_s3 + $0x20] sm:$0xff]  ;;  %v1117_v15 = vld [vmem:[%s1499_s1 + $0x28] sm:$0xff]   ;;  %v335_v16 = vld [vmem:[%s1501_s3 + $0x30] sm:$0xff] }
  0x3c   :  { %989 = vmatprep.mubr.bf16.mxu0 %v93_v6  ;;  %v1120_v14 = vld [vmem:[#allocation8] sm:$0xff]   ;;  %v1122_v17 = vld [vmem:[#allocation8 + $0x8] sm:$0xff]   ;;  %v1118_v18 = vld [vmem:[%s1499_s1 + $0x30] sm:$0xff]  }
  0x3d   :  { %1005 = vmatprep.subr.bf16.mxu1 %v1120_v14  ;;  %v336_v19 = vld [vmem:[%s1501_s3 + $0x38] sm:$0xff]  ;;  %v337_v20 = vld [vmem:[%s1501_s3 + $0x40] sm:$0xff]  ;;  %v338_v21 = vld [vmem:[%s1501_s3 + $0x48] sm:$0xff] }
  0x3e   :  { %976 = vmatpush3.bf16.msra.mxu0 %v1113_v2  ;;  %352 = vperm.xlu0 %1110, %v330_v9   ;;  %v1124_v22 = vld [vmem:[#allocation8 + $0x10] sm:$0xff]   ;;  %v1119_v23 = vld [vmem:[%s1499_s1 + $0x38] sm:$0xff]   ;;  %v90_v27 = vld [vmem:[#allocation3 + $0x8] sm:$0xff] }
  0x3f   :  { %977 = vmatprep.subr.bf16.mxu0 %v1114_v3  ;;  %362 = vperm.xlu1 %1111, %v332_v10   ;;  %v339_v24 = vld [vmem:[%s1501_s3 + $0x50] sm:$0xff]  ;;  %v340_v25 = vld [vmem:[%s1501_s3 + $0x58] sm:$0xff]  ;;  %v1395_v28 = vld [vmem:[#allocation6] sm:$0xff]   ;;  %v95_v33 = vunpack.c.l.s8.bf16 %v90_v27  ;;  %v96_v41 = vunpack.c.h.s8.bf16 %v90_v27 }
  0x40   :  { %1006 = vmatpush3.bf16.msra.mxu1 %v1120_v14  ;;  %v1126_v26 = vld [vmem:[#allocation8 + $0x18] sm:$0xff]   ;;  %v341_v29 = vld [vmem:[%s1501_s3 + $0x60] sm:$0xff]  ;;  %v342_v32 = vld [vmem:[%s1501_s3 + $0x68] sm:$0xff] }
  0x41   :  { %1007 = vmatprep.subr.bf16.mxu1 %v1122_v17  ;;  %v1128_v30 = vld [vmem:[#allocation8 + $0x20] sm:$0xff]   ;;  %v1404_v34 = vld [vmem:[#allocation6 + $0x8] sm:$0xff]   ;;  %v343_v36 = vld [vmem:[%s1501_s3 + $0x70] sm:$0xff] }
  0x42   :  { %978 = vmatpush3.bf16.msra.mxu0 %v1114_v3  ;;  %367 = vperm.xlu0 %1110, %v333_v12   ;;  %v1130_v35 = vld [vmem:[#allocation8 + $0x28] sm:$0xff]   ;;  %v91_v37 = vld [vmem:[#allocation3 + $0x10] sm:$0xff]  ;;  %v344_v38 = vld [vmem:[%s1501_s3 + $0x78] sm:$0xff] }
  0x43   :  { %979 = vmatprep.subr.bf16.mxu0 %v1115_v4  ;;  %372 = vperm.xlu1 %1111, %v334_v13   ;;  %v1415_v39 = vld [vmem:[#allocation6 + $0x10] sm:$0xff]   ;;  %v97_v42 = vunpack.c.l.s8.bf16 %v91_v37  ;;  %v1419_v43 = vld [vmem:[#allocation6 + $0x18] sm:$0xff]   ;;  %v1423_v45 = vld [vmem:[#allocation6 + $0x20] sm:$0xff]   ;;  %v98_v46 = vunpack.c.h.s8.bf16 %v91_v37 }
  0x44   :  { %1008 = vmatpush3.bf16.msra.mxu1 %v1122_v17  ;;  %v1132_v40 = vld [vmem:[#allocation8 + $0x30] sm:$0xff]   ;;  %v92_v44 = vld [vmem:[#allocation3 + $0x18] sm:$0xff]  ;;  %v1427_v48 = vld [vmem:[#allocation6 + $0x28] sm:$0xff]  }
  0x45   :  { %1009 = vmatprep.subr.bf16.mxu1 %v1124_v22  ;;  %v99_v47 = vunpack.c.l.s8.bf16 %v92_v44  ;;  %v100_v49 = vunpack.c.h.s8.bf16 %v92_v44  ;;  %v1432_v50 = vld [vmem:[#allocation6 + $0x30] sm:$0xff]   ;;  %v1134_v51 = vld [vmem:[#allocation8 + $0x38] sm:$0xff]   ;;  %v1136_v53 = vld [vmem:[%s1500_s2] sm:$0xff]  }
  0x46   :  { %980 = vmatpush3.bf16.msra.mxu0 %v1115_v4  ;;  %377 = vperm.xlu0 %1110, %v335_v16   ;;  %v1436_v52 = vld [vmem:[#allocation6 + $0x38] sm:$0xff]   ;;  %v1137_v54 = vld [vmem:[%s1500_s2 + $0x8] sm:$0xff]   ;;  %v1138_v55 = vld [vmem:[%s1500_s2 + $0x10] sm:$0xff]  }
  0x47   :  { %981 = vmatprep.subr.bf16.mxu0 %v1116_v11  ;;  %382 = vperm.xlu1 %1111, %v336_v19   ;;  %v1139_v56 = vld [vmem:[%s1500_s2 + $0x18] sm:$0xff]  }
  0x48   :  { %1010 = vmatpush3.bf16.msra.mxu1 %v1124_v22 }
  0x49   :  { %1011 = vmatprep.subr.bf16.mxu1 %v1126_v26 }
  0x4a   :  { %982 = vmatpush3.bf16.msra.mxu0 %v1116_v11  ;;  %387 = vperm.xlu0 %1110, %v337_v20  }
  0x4b   :  { %983 = vmatprep.subr.bf16.mxu0 %v1117_v15  ;;  %392 = vperm.xlu1 %1111, %v338_v21  }
  0x4c   :  { %1012 = vmatpush3.bf16.msra.mxu1 %v1126_v26 }
  0x4d   :  { %1013 = vmatprep.subr.bf16.mxu1 %v1128_v30 }
  0x4e   :  { %984 = vmatpush3.bf16.msra.mxu0 %v1117_v15  ;;  %397 = vperm.xlu0 %1110, %v339_v24  }
  0x4f   :  { %985 = vmatprep.subr.bf16.mxu0 %v1118_v18  ;;  %402 = vperm.xlu1 %1111, %v340_v25  }
  0x50   :  { %1014 = vmatpush3.bf16.msra.mxu1 %v1128_v30 }
  0x51   :  { %1015 = vmatprep.subr.bf16.mxu1 %v1130_v35 }
  0x52   :  { %986 = vmatpush3.bf16.msra.mxu0 %v1118_v18  ;;  %407 = vperm.xlu0 %1110, %v341_v29  }
  0x53   :  { %987 = vmatprep.subr.bf16.mxu0 %v1119_v23  ;;  %412 = vperm.xlu1 %1111, %v342_v32  }
  0x54   :  { %1016 = vmatpush3.bf16.msra.mxu1 %v1130_v35 }
  0x55   :  { %1017 = vmatprep.subr.bf16.mxu1 %v1132_v40 }
  0x56   :  { %988 = vmatpush3.bf16.msra.mxu0 %v1119_v23  ;;  %417 = vperm.xlu0 %1110, %v343_v36  }
  0x57   :  { %1037 = vmatprep.subr.bf16.mxu0 %v1395_v28  ;;  %422 = vperm.xlu1 %1111, %v344_v38  }
  0x58   :  { %1018 = vmatpush3.bf16.msra.mxu1 %v1132_v40 }
  0x59   :  { %990 = vmatmul.mubr.bf16.vlgmr.msra.gmra.mrb[0].mxu0 %v94_v31  ;;  %1019 = vmatprep.subr.bf16.mxu1 %v1134_v51 }
  0x5a   :  { %993 = vmatprep.mubr.bf16.mxu0 %v95_v33  ;;  %1038 = vmatpush3.bf16.msra.mxu0 %v1395_v28 }
  0x5b   :  { %1039 = vmatprep.subr.bf16.mxu0 %v1404_v34 }
  0x5c   :  { %1020 = vmatpush3.bf16.msra.mxu1 %v1134_v51 }
  0x5d   :  { %1069 = vmatprep.subr.bf16.mxu1 %v1395_v28 }
  0x5e   :  { %1040 = vmatpush3.bf16.msra.mxu0 %v1404_v34 }
  0x5f   :  { %1041 = vmatprep.subr.bf16.mxu0 %v1415_v39 }
  0x61   :  { %994 = vmatmul.mubr.bf16.gmra.mrb[4].mxu0 %v96_v41 }
  0x62   :  { %997 = vmatprep.mubr.bf16.mxu0 %v97_v42  ;;  %1042 = vmatpush3.bf16.msra.mxu0 %v1415_v39 }
  0x63   :  { %1043 = vmatprep.subr.bf16.mxu0 %v1419_v43 }
  0x66   :  { %1044 = vmatpush3.bf16.msra.mxu0 %v1419_v43 }
  0x67   :  { %1045 = vmatprep.subr.bf16.mxu0 %v1423_v45 }
  0x69   :  { %998 = vmatmul.mubr.bf16.gmra.mrb[8].mxu0 %v98_v46 }
  0x6a   :  { %1001 = vmatprep.mubr.bf16.mxu0 %v99_v47  ;;  %1046 = vmatpush3.bf16.msra.mxu0 %v1423_v45 }
  0x6b   :  { %1047 = vmatprep.subr.bf16.mxu0 %v1427_v48 }
  0x6e   :  { %1048 = vmatpush3.bf16.msra.mxu0 %v1427_v48 }
  0x6f   :  { %1049 = vmatprep.subr.bf16.mxu0 %v1432_v50 }
  0x71   :  { %1002 = vmatmul.mubr.bf16.gmra.mrb[12].mxu0 %v100_v49 }
  0x72   :  { %1050 = vmatpush3.bf16.msra.mxu0 %v1432_v50  ;;  %1053 = vmatprep.mubr.bf16.mxu0 %v1136_v53  ;;  %v1140_v53 = vld [vmem:[%s1500_s2 + $0x20] sm:$0xff]  }
  0x73   :  { %1051 = vmatprep.subr.bf16.mxu0 %v1436_v52 }
  0x76   :  { %1052 = vmatpush3.bf16.msra.mxu0 %v1436_v52 }
  0x79   :  { %1054 = vmatmul.mubr.bf16.vlgmr.msra.gmra.mrb[16].mxu0 %v1137_v54  ;;  %v1143_v54 = vld [vmem:[%s1500_s2 + $0x38] sm:$0xff]  }
  0x7a   :  { %1057 = vmatprep.mubr.bf16.mxu0 %v1138_v55 }
  0x81   :  { %1058 = vmatmul.mubr.bf16.gmra.mrb[20].mxu0 %v1139_v56 }
  0xb9   :  { %v348_v57 = vpop.permute.xlu0 %347 }
  0xba   :  { %v358_v58 = vpop.permute.xlu1 %357 }
  0xbd   :  { %v353_v59 = vpop.permute.xlu0 %352 }
  0xbe   :  { %v363_v60 = vpop.permute.xlu1 %362 }
  0xc1   :  { %v368_v61 = vpop.permute.xlu0 %367 }
  0xc2   :  { %v373_v62 = vpop.permute.xlu1 %372 }
  0xc5   :  { %v378_v0 = vpop.permute.xlu0 %377 }
  0xc6   :  { %v383_v2 = vpop.permute.xlu1 %382 }
  0xc9   :  { %v388_v11 = vpop.permute.xlu0 %387 }
  0xca   :  { %v393_v12 = vpop.permute.xlu1 %392 }
  0xcd   :  { %v398_v21 = vpop.permute.xlu0 %397 }
  0xce   :  { %v403_v23 = vpop.permute.xlu1 %402 }
  0xd2   :  { %v413_v32 = vpop.permute.xlu1 %412 }
  0xd6   :  { %v423_v40 = vpop.permute.xlu1 %422 }
 0x12c   :  { %v991_v63 = vpop.f32.mrb[0].mxu0 }
 0x12d   :  { %v215_v1 = vpop.f32.mrb[1].mxu0  ;;  %v427_v4 = vmul.f32 %v991_v63, %v358_v58 }
 0x12e   :  { %v992_v3 = vpop.f32.mrb[2].mxu0  ;;  %v425_v7 = vmul.f32 %v348_v57, %v215_v1 }
 0x12f   :  { %v428_v5 = vmul.f32 %v992_v3, %v363_v60  ;;  %v218_v6 = vpop.f32.mrb[3].mxu0 }
 0x130   :  { %v426_v8 = vmul.f32 %v353_v59, %v218_v6 }
 0x131   :  { %v442_v9 = vpack.c.bf16 %v428_v5, %v427_v4 }
 0x132   :  { %v441_v10 = vpack.c.bf16 %v426_v8, %v425_v7 }
 0x134   :  { %v995_v13 = vpop.f32.mrb[4].mxu0  ;;  %1021 = vmatprep.mubr.bf16.mxu1 %v441_v10 }
 0x135   :  { %v231_v14 = vpop.f32.mrb[5].mxu0  ;;  %1022 = vmatmul.mubr.bf16.vlgmr.msra.gmra.mrb[0].mxu1 %v442_v9  ;;  %v431_v16 = vmul.f32 %v995_v13, %v378_v0 }
 0x136   :  { %1077 = vmatpush3.bf16.msra.mxu1 %v1395_v28  ;;  %v996_v15 = vpop.f32.mrb[6].mxu0  ;;  %v429_v19 = vmul.f32 %v368_v61, %v231_v14  ;;  %v408_v28 = vpop.permute.xlu0 %407 }
 0x137   :  { %v432_v17 = vmul.f32 %v996_v15, %v383_v2  ;;  %v234_v18 = vpop.f32.mrb[7].mxu0  ;;  %1070 = vmatprep.subr.bf16.mxu1 %v1404_v34 }
 0x138   :  { %v430_v20 = vmul.f32 %v373_v62, %v234_v18  ;;  %v924_v62 = vld [vmem:[%s1504_s6] ss:$0 sm:$0xff] }
 0x139   :  { %v444_v22 = vpack.c.bf16 %v432_v17, %v431_v16 }
 0x13a   :  { %v443_v24 = vpack.c.bf16 %v430_v20, %v429_v19  ;;  %1078 = vmatpush3.bf16.msra.mxu1 %v1404_v34  ;;  %v418_v38 = vpop.permute.xlu0 %417 }
 0x13b   :  { %1071 = vmatprep.subr.bf16.mxu1 %v1415_v39 }
 0x13c   :  { %v999_v25 = vpop.f32.mrb[8].mxu0  ;;  %1025 = vmatprep.mubr.bf16.mxu1 %v443_v24 }
 0x13d   :  { %v247_v26 = vpop.f32.mrb[9].mxu0  ;;  %1026 = vmatmul.mubr.bf16.gmra.mrb[4].mxu1 %v444_v22  ;;  %v435_v29 = vmul.f32 %v999_v25, %v398_v21 }
 0x13e   :  { %1079 = vmatpush3.bf16.msra.mxu1 %v1415_v39  ;;  %v1000_v27 = vpop.f32.mrb[10].mxu0  ;;  %v433_v33 = vmul.f32 %v388_v11, %v247_v26 }
 0x13f   :  { %v436_v30 = vmul.f32 %v1000_v27, %v403_v23  ;;  %v250_v31 = vpop.f32.mrb[11].mxu0  ;;  %1072 = vmatprep.subr.bf16.mxu1 %v1419_v43 }
 0x140   :  { %v434_v35 = vmul.f32 %v393_v12, %v250_v31 }
 0x141   :  { %v446_v36 = vpack.c.bf16 %v436_v30, %v435_v29 }
 0x142   :  { %v445_v34 = vpack.c.bf16 %v434_v35, %v433_v33  ;;  %1080 = vmatpush3.bf16.msra.mxu1 %v1419_v43 }
 0x143   :  { %1073 = vmatprep.subr.bf16.mxu1 %v1423_v45 }
 0x144   :  { %v1003_v37 = vpop.f32.mrb[12].mxu0  ;;  %1029 = vmatprep.mubr.bf16.mxu1 %v445_v34 }
 0x145   :  { %v263_v39 = vpop.f32.mrb[13].mxu0  ;;  %1030 = vmatmul.mubr.bf16.gmra.mrb[8].mxu1 %v446_v36  ;;  %v439_v42 = vmul.f32 %v1003_v37, %v418_v38 }
 0x146   :  { %1081 = vmatpush3.bf16.msra.mxu1 %v1423_v45  ;;  %v1004_v41 = vpop.f32.mrb[14].mxu0  ;;  %v437_v47 = vmul.f32 %v408_v28, %v263_v39  ;;  %v1141_v45 = vld [vmem:[%s1500_s2 + $0x28] sm:$0xff]  }
 0x147   :  { %v440_v44 = vmul.f32 %v1004_v41, %v423_v40  ;;  %v266_v46 = vpop.f32.mrb[15].mxu0  ;;  %1074 = vmatprep.subr.bf16.mxu1 %v1427_v48 }
 0x148   :  { %v438_v49 = vmul.f32 %v413_v32, %v266_v46 }
 0x149   :  { %v448_v51 = vpack.c.bf16 %v440_v44, %v439_v42 }
 0x14a   :  { %v447_v43 = vpack.c.bf16 %v438_v49, %v437_v47  ;;  %1082 = vmatpush3.bf16.msra.mxu1 %v1427_v48  ;;  %v1142_v48 = vld [vmem:[%s1500_s2 + $0x30] sm:$0xff]   ;;  %s1246_s2 = smov [#allocation9]  }
 0x14b   :  { %1075 = vmatprep.subr.bf16.mxu1 %v1432_v50  ;;  %s879_s6 = sshll.u32 %s1246_s2, 4  ;;  %s880_s6 = int_to_ptr.vmem [resolvable:$true] %s879_s6 }
 0x14c   :  { %1033 = vmatprep.mubr.bf16.mxu1 %v447_v43  ;;  %s1210_s1 = scalar_lea.vmem %s880_s6, 2048  ;;  %p1215_p11 = scmp.lt.s32.totalorder %s880_s6, %s880_s6 }
 0x14d   :  { %1034 = vmatmul.mubr.bf16.gmra.mrb[12].mxu1 %v448_v51  ;;  %p1211_p10 = scmp.ne.s32.totalorder %s880_s6, %s1210_s1  ;;  %p1216_p12 = scmp.lt.s32.totalorder %s1210_s1, %s1210_s1 }
 0x14e   :  { %1083 = vmatpush3.bf16.msra.mxu1 %v1432_v50  ;;  %1061 = vmatprep.mubr.bf16.mxu1 %v1140_v53  ;;  %v1055_v50 = vpop.f32.mrb[16].mxu0 }
 0x14f   :  { %1076 = vmatprep.subr.bf16.mxu1 %v1436_v52  ;;  %v772_v55 = vpop.f32.mrb[17].mxu0  ;;  %p1217_p13 = por %p1216_p12, %p1215_p11 }
 0x150   :  { %v1056_v56 = vpop.f32.mrb[18].mxu0 }
 0x151   :  { %v775_v57 = vpop.f32.mrb[19].mxu0  ;;  %p1218_p0 = pnand %p1217_p13, %p1211_p10 }
 0x152   :  { %1084 = vmatpush3.bf16.msra.mxu1 %v1436_v52 }
 0x154   :  { %v1059_v58 = vpop.f32.mrb[20].mxu0 }
 0x155   :  { %1062 = vmatmul.mubr.bf16.vlgmr.msra.gmra.mrb[8].mxu1 %v1141_v45  ;;  %v788_v59 = vpop.f32.mrb[21].mxu0 }
 0x156   :  { %1065 = vmatprep.mubr.bf16.mxu1 %v1142_v48  ;;  %v1060_v60 = vpop.f32.mrb[22].mxu0 }
 0x157   :  { %v791_v61 = vpop.f32.mrb[23].mxu0 }
 0x15d   :  { %1066 = vmatmul.mubr.bf16.gmra.mrb[12].mxu1 %v1143_v54 }
 0x208   :  { %v1023_v52 = vpop.f32.mrb[0].mxu1 }
 0x209   :  { %v781_v63 = vadd.f32 %v1055_v50, %v1023_v52  ;;  %v579_v0 = vpop.f32.mrb[1].mxu1 }
 0x20a   :  { %v773_v1 = vadd.f32 %v772_v55, %v579_v0  ;;  %v1024_v2 = vpop.f32.mrb[2].mxu1 }
 0x20b   :  { %v844_v3 = vadd.f32 %v924_v62, %v781_v63  ;;  %v784_v4 = vadd.f32 %v1056_v56, %v1024_v2  ;;  %v582_v5 = vpop.f32.mrb[3].mxu1 }
 0x20c   :  { %v842_v6 = vadd.f32 %v924_v62, %v773_v1  ;;  %v776_v7 = vadd.f32 %v775_v57, %v582_v5 }
 0x20d   :  { %860 = vst [vmem:[#allocation9 + $0x10] sm:$0xff] %v844_v3  ;;  %v845_v8 = vadd.f32 %v924_v62, %v784_v4 }
 0x20e   :  { %858 = vst [vmem:[#allocation9] sm:$0xff] %v842_v6  ;;  %v843_v9 = vadd.f32 %v924_v62, %v776_v7 }
 0x20f   :  { %861 = vst [vmem:[#allocation9 + $0x18] sm:$0xff] %v845_v8 }
 0x210   :  { %859 = vst [vmem:[#allocation9 + $0x8] sm:$0xff] %v843_v9  ;;  %v1027_v10 = vpop.f32.mrb[4].mxu1 }
 0x211   :  { %v797_v11 = vadd.f32 %v1059_v58, %v1027_v10  ;;  %v595_v12 = vpop.f32.mrb[5].mxu1 }
 0x212   :  { %v789_v13 = vadd.f32 %v788_v59, %v595_v12  ;;  %v1028_v14 = vpop.f32.mrb[6].mxu1 }
 0x213   :  { %v848_v15 = vadd.f32 %v924_v62, %v797_v11  ;;  %v800_v16 = vadd.f32 %v1060_v60, %v1028_v14  ;;  %v598_v17 = vpop.f32.mrb[7].mxu1 }
 0x214   :  { %v846_v18 = vadd.f32 %v924_v62, %v789_v13  ;;  %v792_v19 = vadd.f32 %v791_v61, %v598_v17 }
 0x215   :  { %864 = vst [vmem:[#allocation9 + $0x30] sm:$0xff] %v848_v15  ;;  %v849_v20 = vadd.f32 %v924_v62, %v800_v16 }
 0x216   :  { %862 = vst [vmem:[#allocation9 + $0x20] sm:$0xff] %v846_v18  ;;  %v847_v21 = vadd.f32 %v924_v62, %v792_v19 }
 0x217   :  { %865 = vst [vmem:[#allocation9 + $0x38] sm:$0xff] %v849_v20 }
 0x218   :  { %863 = vst [vmem:[#allocation9 + $0x28] sm:$0xff] %v847_v21 }
 0x228   :  { %v1063_v22 = vpop.f32.mrb[8].mxu1 }
 0x229   :  { %v852_v23 = vadd.f32 %v1063_v22, %v924_v62  ;;  %v804_v24 = vpop.f32.mrb[9].mxu1 }
 0x22a   :  { %v850_v25 = vadd.f32 %v924_v62, %v804_v24  ;;  %v1064_v26 = vpop.f32.mrb[10].mxu1 }
 0x22b   :  { %868 = vst [vmem:[#allocation9 + $0x50] sm:$0xff] %v852_v23  ;;  %v853_v27 = vadd.f32 %v1064_v26, %v924_v62  ;;  %v807_v28 = vpop.f32.mrb[11].mxu1 }
 0x22c   :  { %866 = vst [vmem:[#allocation9 + $0x40] sm:$0xff] %v850_v25  ;;  %v851_v29 = vadd.f32 %v924_v62, %v807_v28 }
 0x22d   :  { %869 = vst [vmem:[#allocation9 + $0x58] sm:$0xff] %v853_v27 }
 0x22e   :  { %867 = vst [vmem:[#allocation9 + $0x48] sm:$0xff] %v851_v29 }
 0x230   :  { %v1067_v30 = vpop.f32.mrb[12].mxu1 }
 0x231   :  { %v856_v31 = vadd.f32 %v1067_v30, %v924_v62  ;;  %v820_v32 = vpop.f32.mrb[13].mxu1 }
 0x232   :  { %v854_v33 = vadd.f32 %v924_v62, %v820_v32  ;;  %v1068_v35 = vpop.f32.mrb[14].mxu1 }
 0x233   :  { %872 = vst [vmem:[#allocation9 + $0x70] sm:$0xff] %v856_v31  ;;  %v857_v36 = vadd.f32 %v1068_v35, %v924_v62  ;;  %v823_v34 = vpop.f32.mrb[15].mxu1 }
 0x234   :  { %870 = vst [vmem:[#allocation9 + $0x60] sm:$0xff] %v854_v33  ;;  %v855_v37 = vadd.f32 %v924_v62, %v823_v34 }
 0x235   :  { %873 = vst [vmem:[#allocation9 + $0x78] sm:$0xff] %v857_v36 }
 0x236   :  { %871 = vst [vmem:[#allocation9 + $0x68] sm:$0xff] %v855_v37 }
 0x237   :  { %1221 = shalt.err (!%p1218_p0)
}
 0x238   :  { %s1222_s13 = scalar_lea.hbm %s1505_s7, 2048 }
 0x239   :  { %p1223_p1 = scmp.ne.s32.totalorder %s1505_s7, %s1222_s13  ;;  %p1226_p2 = scmp.lt.u32.totalorder %s1222_s13, %s1505_s7 }
 0x23b   :  { %p1228_p3 = pnand %p1226_p2, %p1223_p1 }
 0x23d   :  { %1231 = shalt.err (!%p1228_p3)
}
 0x23e   :  { %885 = dma.vmem_to_hbm [thread:$0]  %s880_s6, 2048, %s1505_s7, [#allocation5], %s1242_s4, %s1242_s4, %s1243_s25  }
 0x23f   :  { %1236 = dma.done.wait [#allocation5], 2048  }
 0x240   :  { %1237 = vsyncadd [#allocation5], 4294965248 }
 0x241   :  { %889 = vsyncpa [#allocation4], 1 }
 0x242   :  { %890 = vsyncpa [#allocation7], 1 }
 0x243   :  { %891 = vsyncpa [#allocation5], 1 }

</bundles_post_ra>
